<compile_context>
chip_gen: v5e
topology: v5e:2x2
jax: 0.10.0
libtpu: 0.0.40
codegen_flags: <defaults>
</compile_context>

<pallas_src>
import functools

import numpy as np
import jax
import jax.numpy as jnp
from jax import lax
from jax.experimental import pallas as pl
from jax.experimental.pallas import tpu as pltpu

EMBED_DIM = 256
NUM_CLASSES = 21
PADDED_CLASSES = 128      # lane-dense class padding for the (small) hc1 x wc1 logits only


# ----------------------------------------------------------------------------
# Compiler params (generation-aware VMEM limit) and tiling helpers.
# ----------------------------------------------------------------------------
def _vmem_limit_bytes():
    phys = 128 * 1024 * 1024
    try:
        info = pltpu.get_tpu_info()
        phys = int(getattr(info, "vmem_capacity_bytes", phys))
    except Exception:
        pass
    if phys >= 96 * 1024 * 1024:       # v5e / v6e: 128 MiB physical
        return 100 * 1024 * 1024
    return 40 * 1024 * 1024            # v7x-class parts: 64 MiB physical per core


def _cparams(sems):
    return pltpu.CompilerParams(dimension_semantics=sems,
                                vmem_limit_bytes=_vmem_limit_bytes())


def _row_tile(m):
    """Largest MXU-friendly row tile (<=2048) that still yields >=2 grid blocks."""
    for tm in (2048, 1024, 512, 256, 128):
        if m % tm == 0 and m // tm >= 2:
            return tm
    for tm in (2048, 1024, 512, 256, 128):
        if m % tm == 0:
            return tm
    return min(m, 256)


# ----------------------------------------------------------------------------
# Trace-time bilinear interpolation tables (match F.interpolate for both
# align_corners=False and align_corners=True, incl. index clamping).
# ----------------------------------------------------------------------------
def _source_positions(in_size, out_size, align_corners):
    if align_corners:
        if out_size == 1:
            src = np.zeros((out_size,), np.float64)
        else:
            src = np.arange(out_size, dtype=np.float64) * (in_size - 1) / (out_size - 1)
    else:
        scale = in_size / out_size
        src = (np.arange(out_size, dtype=np.float64) + 0.5) * scale - 0.5
        src = np.maximum(src, 0.0)
    i0 = np.minimum(np.floor(src).astype(np.int64), in_size - 1)
    i1 = np.minimum(i0 + 1, in_size - 1)
    w1 = src - i0
    w0 = 1.0 - w1
    return i0, i1, w0, w1


def _interp_matrix(in_size, out_size, align_corners):
    i0, i1, w0, w1 = _source_positions(in_size, out_size, align_corners)
    a = np.zeros((out_size, in_size), np.float64)
    a[np.arange(out_size), i0] += w0
    a[np.arange(out_size), i1] += w1
    return a


def _pick_group(hx, wx, wt, cap_bytes=2 * 1024 * 1024):
    """Largest divisor of hx whose block-diagonal W-resize matrix stays <= cap."""
    g = 1
    for cand in range(1, hx + 1):
        if hx % cand == 0 and 2 * cand * cand * wt * wx <= cap_bytes:
            g = cand
    return g


def _w_resize_blockdiag(wx, wt, g, align_corners):
    aw = _interp_matrix(wx, wt, align_corners)          # (wt, wx)
    bd = np.zeros((g * wt, g * wx), np.float32)
    for j in range(g):
        bd[j * wt:(j + 1) * wt, j * wx:(j + 1) * wx] = aw
    return jnp.asarray(bd, jnp.bfloat16)


# ----------------------------------------------------------------------------
# Kernel 1: per-pixel Linear (Cin -> 256) fused with the separable bilinear
# upsample to c1 resolution.  Grid over batch (parallel across TensorCores).
#   step 2: W-axis resize = few grouped block-diagonal matmuls (I_g (x) Aw),
#           everything stays in the relayout-free (rows, channels) layout.
#   step 3: H-axis resize = per-output-row 2-source-row blend (VPU), driven by
#           SMEM index/weight tables via lax.fori_loop (no unrolled code bloat,
#           no large f32 intermediate).
# ----------------------------------------------------------------------------
def _proj_resize_kernel(idx0_ref, idx1_ref, w0_ref, w1_ref,     # SMEM (scalar prefetch)
                        x_ref, w_ref, b_ref, bd_ref, o_ref, t1_ref,
                        *, hx, wx, ht, wt, c, g):
    # 1) MLP projection at source resolution (same op order as the PyTorch module).
    p = jnp.dot(x_ref[0], w_ref[...], preferred_element_type=jnp.float32)
    p = (p + b_ref[...]).astype(jnp.bfloat16)                           # (hx*wx, 256)

    # 2) W-axis bilinear resize via grouped block-diagonal matmuls.
    for j in range(hx // g):
        t1_ref[j * g * wt:(j + 1) * g * wt, :] = jnp.dot(
            bd_ref[...], p[j * g * wx:(j + 1) * g * wx, :],
            preferred_element_type=jnp.float32).astype(jnp.bfloat16)

    # 3) H-axis bilinear resize: each output row blends at most two source rows.
    def blend(y, carry):
        r0 = pl.multiple_of(idx0_ref[y] * wt, wt)
        r1 = pl.multiple_of(idx1_ref[y] * wt, wt)
        s = (w0_ref[y] * t1_ref[pl.ds(r0, wt), :].astype(jnp.float32)
             + w1_ref[y] * t1_ref[pl.ds(r1, wt), :].astype(jnp.float32))
        o_ref[0, pl.ds(pl.multiple_of(y * wt, wt), wt), :] = s.astype(o_ref.dtype)
        return carry

    lax.fori_loop(0, ht, blend, 0)


def mlp_proj_resize(x_rows, hx, wx, w, b, ht, wt, align_corners=False):
    """x_rows: (N, hx*wx, Cin) -> (N, ht*wt, 256) bf16 (projection + bilinear upsample)."""
    n, _, cin = x_rows.shape
    c = w.shape[1]
    g = _pick_group(hx, wx, wt)
    bd = _w_resize_blockdiag(wx, wt, g, align_corners)
    i0, i1, w0, w1 = _source_positions(hx, ht, align_corners)
    kernel = functools.partial(_proj_resize_kernel, hx=hx, wx=wx, ht=ht, wt=wt, c=c, g=g)
    return pl.pallas_call(
        kernel,
        out_shape=jax.ShapeDtypeStruct((n, ht * wt, c), jnp.bfloat16),
        grid_spec=pltpu.PrefetchScalarGridSpec(
            num_scalar_prefetch=4,
            grid=(n,),
            in_specs=[
                pl.BlockSpec((1, hx * wx, cin), lambda i, *_: (i, 0, 0)),
                pl.BlockSpec((cin, c), lambda i, *_: (0, 0)),
                pl.BlockSpec((1, c), lambda i, *_: (0, 0)),
                pl.BlockSpec((g * wt, g * wx), lambda i, *_: (0, 0)),
            ],
            out_specs=pl.BlockSpec((1, ht * wt, c), lambda i, *_: (i, 0, 0)),
            scratch_shapes=[pltpu.VMEM((hx * wt, c), jnp.bfloat16)],
        ),
        compiler_params=_cparams(("parallel",)),
    )(jnp.asarray(i0, jnp.int32), jnp.asarray(i1, jnp.int32),
      jnp.asarray(w0, jnp.float32), jnp.asarray(w1, jnp.float32),
      x_rows.astype(jnp.bfloat16), w.astype(jnp.bfloat16),
      b.reshape(1, c).astype(jnp.float32), bd)


# ----------------------------------------------------------------------------
# Kernel 2: channel concat + linear_fuse + ReLU + linear_pred in one pass.
# The concat is folded into partial matmuls; c1's MLP is folded into its partial
# matmul at trace time (no nonlinearity sits between them), so the (M,256) l1
# tensor never touches HBM.
# ----------------------------------------------------------------------------
def _fuse_pred_kernel(x4_ref, x3_ref, x2_ref, x1_ref,
                      wf4_ref, wf3_ref, wf2_ref, w1f_ref, bf_ref,
                      wp_ref, bp_ref, o_ref):
    acc = jnp.dot(x4_ref[...], wf4_ref[...], preferred_element_type=jnp.float32)
    acc = acc + jnp.dot(x3_ref[...], wf3_ref[...], preferred_element_type=jnp.float32)
    acc = acc + jnp.dot(x2_ref[...], wf2_ref[...], preferred_element_type=jnp.float32)
    acc = acc + jnp.dot(x1_ref[...], w1f_ref[...], preferred_element_type=jnp.float32)
    # TODO(synk): ConvModule here uses its mmcv defaults (Conv2d + ReLU, no norm); a
    # norm_cfg-configured BatchNorm/SyncBN is not part of the given module code.
    fused = jnp.maximum(acc + bf_ref[...], 0.0).astype(jnp.bfloat16)     # (tm, 256)
    out = jnp.dot(fused, wp_ref[...], preferred_element_type=jnp.float32) + bp_ref[...]
    o_ref[...] = out.astype(o_ref.dtype)


def fuse_and_predict(l4, l3, l2, c1_rows, wf, bf, w1, b1, wp, bp):
    """l*: (M, 256) bf16, c1_rows: (M, 64).  Returns (M, PADDED_CLASSES) bf16 logits."""
    m = l4.shape[0]
    e = EMBED_DIM
    nc = wp.shape[1]
    k1 = c1_rows.shape[1]
    wf4, wf3, wf2, wf1 = wf[0:e], wf[e:2 * e], wf[2 * e:3 * e], wf[3 * e:4 * e]
    # (x@w1 + b1)@wf1 == x@(w1@wf1) + (b1@wf1): fold c1's projection into the fuse.
    w1f = jnp.dot(w1.astype(jnp.float32), wf1.astype(jnp.float32))        # (64, 256)
    b_eff = bf.astype(jnp.float32) + jnp.dot(b1.astype(jnp.float32), wf1.astype(jnp.float32))
    wp_pad = jnp.pad(wp, ((0, 0), (0, PADDED_CLASSES - nc)))
    bp_pad = jnp.pad(bp, (0, PADDED_CLASSES - nc))
    tm = _row_tile(m)
    row = lambda i: (i, 0)
    const = lambda i: (0, 0)
    return pl.pallas_call(
        _fuse_pred_kernel,
        out_shape=jax.ShapeDtypeStruct((m, PADDED_CLASSES), jnp.bfloat16),
        grid_spec=pltpu.PrefetchScalarGridSpec(
            num_scalar_prefetch=0,
            grid=(pl.cdiv(m, tm),),
            in_specs=[pl.BlockSpec((tm, e), row)] * 3
                   + [pl.BlockSpec((tm, k1), row)]
                   + [pl.BlockSpec((e, e), const)] * 3
                   + [pl.BlockSpec((k1, e), const),
                      pl.BlockSpec((1, e), const),
                      pl.BlockSpec((e, PADDED_CLASSES), const),
                      pl.BlockSpec((1, PADDED_CLASSES), const)],
            out_specs=pl.BlockSpec((tm, PADDED_CLASSES), row),
        ),
        compiler_params=_cparams(("parallel",)),
    )(l4.astype(jnp.bfloat16), l3.astype(jnp.bfloat16), l2.astype(jnp.bfloat16),
      c1_rows.astype(jnp.bfloat16),
      wf4.astype(jnp.bfloat16), wf3.astype(jnp.bfloat16), wf2.astype(jnp.bfloat16),
      w1f.astype(jnp.bfloat16), b_eff.reshape(1, e),
      wp_pad.astype(jnp.bfloat16), bp_pad.reshape(1, PADDED_CLASSES).astype(jnp.float32))


# ----------------------------------------------------------------------------
# Kernel 3: final bilinear upsample of the class logits, channel-major.
# Grid = (batch, class); each step is two small matmuls and writes one (H, W)
# f32 plane of the NCHW output directly -> tiny VMEM blocks on every generation,
# no padded-class writeback, no follow-up slice/transpose pass, and >=21 parallel
# grid blocks even at batch 1 (megacore friendly).
# ----------------------------------------------------------------------------
def _logits_resize_kernel(x_ref, awt_ref, ah_ref, o_ref):
    t = jnp.dot(x_ref[0, 0], awt_ref[...], preferred_element_type=jnp.float32)   # (hx, W)
    t = t.astype(jnp.bfloat16)
    o_ref[0, 0] = jnp.dot(ah_ref[...], t, preferred_element_type=jnp.float32
                          ).astype(o_ref.dtype)                                  # (H, W)


def resize_logits_nchw(x_nchw, out_h, out_w, align_corners=True):
    """x_nchw: (N, C, hx, wx) -> (N, C, out_h, out_w) f32, bilinear."""
    n, cc, hx, wx = x_nchw.shape
    awt = jnp.asarray(_interp_matrix(wx, out_w, align_corners).T, jnp.bfloat16)  # (wx, W)
    ah = jnp.asarray(_interp_matrix(hx, out_h, align_corners), jnp.bfloat16)     # (H, hx)
    # TODO(synk): for outputs much larger than ~2k x 2k, also tile out_h into the grid.
    return pl.pallas_call(
        _logits_resize_kernel,
        out_shape=jax.ShapeDtypeStruct((n, cc, out_h, out_w), jnp.float32),
        grid_spec=pltpu.PrefetchScalarGridSpec(
            num_scalar_prefetch=0,
            grid=(n, cc),
            in_specs=[
                pl.BlockSpec((1, 1, hx, wx), lambda b, c: (b, c, 0, 0)),
                pl.BlockSpec((wx, out_w), lambda b, c: (0, 0)),
                pl.BlockSpec((out_h, hx), lambda b, c: (0, 0)),
            ],
            out_specs=pl.BlockSpec((1, 1, out_h, out_w), lambda b, c: (b, c, 0, 0)),
        ),
        compiler_params=_cparams(("parallel", "parallel")),
    )(x_nchw.astype(jnp.bfloat16), awt, ah)


# ----------------------------------------------------------------------------
# Decode head + forward (need_fp=False path).
# ----------------------------------------------------------------------------
def segformer_decode(c1, c2, c3, c4, p):
    n, _, hc1, wc1 = c1.shape

    def to_rows(x):      # single NCHW -> (N, H*W, C) boundary transform per level
        b, ch, hh, ww = x.shape
        return jnp.transpose(x, (0, 2, 3, 1)).reshape(b, hh * ww, ch)

    l4 = mlp_proj_resize(to_rows(c4), c4.shape[2], c4.shape[3], p["w4"], p["b4"],
                         hc1, wc1, align_corners=False)
    l3 = mlp_proj_resize(to_rows(c3), c3.shape[2], c3.shape[3], p["w3"], p["b3"],
                         hc1, wc1, align_corners=False)
    l2 = mlp_proj_resize(to_rows(c2), c2.shape[2], c2.shape[3], p["w2"], p["b2"],
                         hc1, wc1, align_corners=False)
    c1_rows = to_rows(c1)                               # c1 needs no resize

    m = n * hc1 * wc1
    pred = fuse_and_predict(l4.reshape(m, EMBED_DIM), l3.reshape(m, EMBED_DIM),
                            l2.reshape(m, EMBED_DIM), c1_rows.reshape(m, c1.shape[1]),
                            p["w_fuse"], p["b_fuse"], p["w1"], p["b1"],
                            p["w_pred"], p["b_pred"])
    return pred.reshape(n, hc1, wc1, PADDED_CLASSES)


def segformer_forward(inputs, c1, c2, c3, c4, params):
    """need_fp=False path of SegFormer.forward: returns (out, c4)."""
    h, w = inputs.shape[-2], inputs.shape[-1]
    pred = segformer_decode(c1, c2, c3, c4, params)               # (N, hc1, wc1, 128) bf16
    # Small tensor: keep only the 21 real classes and go channel-major BEFORE the big
    # upsample, so the final kernel emits the NCHW f32 logits directly.
    pred_chw = jnp.transpose(pred[..., :NUM_CLASSES], (0, 3, 1, 2))
    out = resize_logits_nchw(pred_chw, h, w, align_corners=True)  # (N, 21, H, W) f32
    return out, c4


# ----------------------------------------------------------------------------
# Deterministic parameter init (shapes from SegFormer.__init__).
# ----------------------------------------------------------------------------
def init_params(key):
    ks = jax.random.split(key, 12)

    def lin(kw, kb, cin, cout):
        return (0.02 * jax.random.normal(kw, (cin, cout), jnp.float32),
                0.01 * jax.random.normal(kb, (cout,), jnp.float32))

    w4, b4 = lin(ks[0], ks[1], 512, EMBED_DIM)
    w3, b3 = lin(ks[2], ks[3], 320, EMBED_DIM)
    w2, b2 = lin(ks[4], ks[5], 128, EMBED_DIM)
    w1, b1 = lin(ks[6], ks[7], 64, EMBED_DIM)
    wf, bf = lin(ks[8], ks[9], 4 * EMBED_DIM, EMBED_DIM)
    wp, bp = lin(ks[10], ks[11], EMBED_DIM, NUM_CLASSES)
    return dict(w4=w4, b4=b4, w3=w3, b3=b3, w2=w2, b2=b2, w1=w1, b1=b1,
                w_fuse=wf, b_fuse=bf, w_pred=wp, b_pred=bp)


if __name__ == "__main__":
    N, H, W = 2, 64, 64
    key = jax.random.PRNGKey(0)
    k_in, k_feat, k_par = jax.random.split(key, 3)
    inputs = jax.random.normal(k_in, (N, 3, H, W), jnp.float32)   # NCHW (PyTorch convention)

    # TODO(synk): mit_b5 pretrained MiT-B5 backbone is an external module; its multi-scale
    # feature pyramid (c1..c4) is synthesized deterministically at the shapes the backbone
    # would emit for a (N,3,H,W) input.
    k1, k2, k3, k4 = jax.random.split(k_feat, 4)
    c1 = jax.random.normal(k1, (N, 64,  H // 4,  W // 4),  jnp.float32)
    c2 = jax.random.normal(k2, (N, 128, H // 8,  W // 8),  jnp.float32)
    c3 = jax.random.normal(k3, (N, 320, H // 16, W // 16), jnp.float32)
    c4 = jax.random.normal(k4, (N, 512, H // 32, W // 32), jnp.float32)

    params = init_params(k_par)

    out, c4_ret = segformer_forward(inputs, c1, c2, c3, c4, params)
    jax.block_until_ready(out)

    assert out.shape == (N, NUM_CLASSES, H, W), out.shape
    assert c4_ret.shape == c4.shape
    assert out.dtype == jnp.float32
    print("KERNEL_OK")
</pallas_src>

<mosaic_0001>
module attributes {stable_mosaic.version = 11 : i64} {
  func.func @_proj_resize_kernel(%arg0: i32, %arg1: memref<16xi32, #tpu.memory_space<smem>>, %arg2: memref<16xi32, #tpu.memory_space<smem>>, %arg3: memref<16xf32, #tpu.memory_space<smem>>, %arg4: memref<16xf32, #tpu.memory_space<smem>>, %arg5: memref<1x4x512xbf16, #tpu.memory_space<vmem>>, %arg6: memref<512x256xbf16, #tpu.memory_space<vmem>>, %arg7: memref<1x256xf32, #tpu.memory_space<vmem>>, %arg8: memref<32x4xbf16, #tpu.memory_space<vmem>>, %arg9: memref<1x256x256xbf16, #tpu.memory_space<vmem>>, %arg10: memref<32x256xbf16, #tpu.memory_space<vmem>>) attributes {dimension_semantics = [#tpu.dimension_semantics<parallel>], iteration_bounds = array<i64: 2>, scalar_prefetch = 4 : i64, scratch_operands = 1 : i64, tpu.core_type = #tpu.core_type<tc>, window_params = [{transform_indices = @transform_0, window_bounds = array<i64: 1, 4, 512>}, {pipeline_mode = #tpu.pipeline_mode<synchronous>, transform_indices = @transform_1, window_bounds = array<i64: 512, 256>}, {pipeline_mode = #tpu.pipeline_mode<synchronous>, transform_indices = @transform_2, window_bounds = array<i64: 1, 256>}, {pipeline_mode = #tpu.pipeline_mode<synchronous>, transform_indices = @transform_3, window_bounds = array<i64: 32, 4>}, {transform_indices = @transform_4, window_bounds = array<i64: 1, 256, 256>}]} {
    %c0 = arith.constant 0 : index
    %c0_0 = arith.constant 0 : index
    %c0_1 = arith.constant 0 : index
    %0 = vector.load %arg5[%c0, %c0_0, %c0_1] : memref<1x4x512xbf16, #tpu.memory_space<vmem>>, vector<1x4x512xbf16>
    %1 = vector.shape_cast %0 : vector<1x4x512xbf16> to vector<4x512xbf16>
    %c0_2 = arith.constant 0 : index
    %c0_3 = arith.constant 0 : index
    %2 = vector.load %arg6[%c0_2, %c0_3] : memref<512x256xbf16, #tpu.memory_space<vmem>>, vector<512x256xbf16>
    %cst = arith.constant dense<0.000000e+00> : vector<4x256xf32>
    %3 = tpu.matmul %1, %2, %cst {dimension_numbers = #tpu.dot_dimension_numbers<[1], [0], [0], [1], [0, 0, 1, 1], [], []>} : vector<4x512xbf16>, vector<512x256xbf16>, vector<4x256xf32> -> vector<4x256xf32>
    %c0_4 = arith.constant 0 : index
    %c0_5 = arith.constant 0 : index
    %4 = vector.load %arg7[%c0_4, %c0_5] : memref<1x256xf32, #tpu.memory_space<vmem>>, vector<1x256xf32>
    %5 = vector.broadcast %4 : vector<1x256xf32> to vector<4x256xf32>
    %6 = arith.addf %3, %5 : vector<4x256xf32>
    %7 = arith.truncf %6 : vector<4x256xf32> to vector<4x256xbf16>
    %c0_6 = arith.constant 0 : index
    %c0_7 = arith.constant 0 : index
    %8 = vector.load %arg8[%c0_6, %c0_7] : memref<32x4xbf16, #tpu.memory_space<vmem>>, vector<32x4xbf16>
    %cst_8 = arith.constant dense<0.000000e+00> : vector<32x256xf32>
    %9 = tpu.matmul %8, %7, %cst_8 {dimension_numbers = #tpu.dot_dimension_numbers<[1], [0], [0], [1], [0, 0, 1, 1], [], []>} : vector<32x4xbf16>, vector<4x256xbf16>, vector<32x256xf32> -> vector<32x256xf32>
    %10 = arith.truncf %9 : vector<32x256xf32> to vector<32x256xbf16>
    %c0_9 = arith.constant 0 : index
    %c0_10 = arith.constant 0 : index
    %11 = vector.load %arg10[%c0_9, %c0_10] : memref<32x256xbf16, #tpu.memory_space<vmem>>, vector<32x256xbf16>
    tpu.vector_store %arg10[%c0_9, %c0_10], %10 {strides = array<i32>} : memref<32x256xbf16, #tpu.memory_space<vmem>>, vector<32x256xbf16>,
    %c0_i32 = arith.constant 0 : i32
    %c16_i32 = arith.constant 16 : i32
    %12 = arith.addi %c0_i32, %c16_i32 : i32
    %c1_i32 = arith.constant 1 : i32
    scf.for %arg11 = %c0_i32 to %12 step %c1_i32  : i32 {
      %13 = arith.index_cast %arg11 : i32 to index
      %14 = memref.load %arg1[%13] : memref<16xi32, #tpu.memory_space<smem>>
      %c16_i32_12 = arith.constant 16 : i32
      %15 = arith.muli %14, %c16_i32_12 : i32
      %16 = tpu.assume_multiple %15, 16 : i32
      %17 = arith.index_cast %arg11 : i32 to index
      %18 = memref.load %arg2[%17] : memref<16xi32, #tpu.memory_space<smem>>
      %c16_i32_13 = arith.constant 16 : i32
      %19 = arith.muli %18, %c16_i32_13 : i32
      %20 = tpu.assume_multiple %19, 16 : i32
      %21 = arith.index_cast %arg11 : i32 to index
      %22 = memref.load %arg3[%21] : memref<16xf32, #tpu.memory_space<smem>>
      %23 = arith.index_cast %16 : i32 to index
      %c0_14 = arith.constant 0 : index
      %24 = vector.load %arg10[%23, %c0_14] : memref<32x256xbf16, #tpu.memory_space<vmem>>, vector<16x256xbf16>
      %25 = arith.extf %24 : vector<16x256xbf16> to vector<16x256xf32>
      %26 = vector.broadcast %22 : f32 to vector<16x256xf32>
      %27 = arith.mulf %26, %25 : vector<16x256xf32>
      %28 = arith.index_cast %arg11 : i32 to index
      %29 = memref.load %arg4[%28] : memref<16xf32, #tpu.memory_space<smem>>
      %30 = arith.index_cast %20 : i32 to index
      %c0_15 = arith.constant 0 : index
      %31 = vector.load %arg10[%30, %c0_15] : memref<32x256xbf16, #tpu.memory_space<vmem>>, vector<16x256xbf16>
      %32 = arith.extf %31 : vector<16x256xbf16> to vector<16x256xf32>
      %33 = vector.broadcast %29 : f32 to vector<16x256xf32>
      %34 = arith.mulf %33, %32 : vector<16x256xf32>
      %35 = arith.addf %27, %34 : vector<16x256xf32>
      %36 = arith.truncf %35 : vector<16x256xf32> to vector<16x256xbf16>
      %c16_i32_16 = arith.constant 16 : i32
      %37 = arith.muli %arg11, %c16_i32_16 : i32
      %38 = tpu.assume_multiple %37, 16 : i32
      %c0_17 = arith.constant 0 : index
      %39 = arith.index_cast %38 : i32 to index
      %c0_18 = arith.constant 0 : index
      %40 = vector.load %arg9[%c0_17, %39, %c0_18] : memref<1x256x256xbf16, #tpu.memory_space<vmem>>, vector<1x16x256xbf16>
      %41 = vector.shape_cast %40 : vector<1x16x256xbf16> to vector<16x256xbf16>
      %42 = vector.shape_cast %36 : vector<16x256xbf16> to vector<1x16x256xbf16>
      tpu.vector_store %arg9[%c0_17, %39, %c0_18], %42 {strides = array<i32>} : memref<1x256x256xbf16, #tpu.memory_space<vmem>>, vector<1x16x256xbf16>,
    }
    %c16_i32_11 = arith.constant 16 : i32
    return
  }
  func.func @transform_0(%arg0: i32, %arg1: memref<16xi32, #tpu.memory_space<smem>>, %arg2: memref<16xi32, #tpu.memory_space<smem>>, %arg3: memref<16xf32, #tpu.memory_space<smem>>, %arg4: memref<16xf32, #tpu.memory_space<smem>>) -> (i32, i32, i32) {
    %c0_i32 = arith.constant 0 : i32
    %c0_i32_0 = arith.constant 0 : i32
    %c0_i32_1 = arith.constant 0 : i32
    return %arg0, %c0_i32, %c0_i32_0 : i32, i32, i32
  }
  func.func @transform_1(%arg0: i32, %arg1: memref<16xi32, #tpu.memory_space<smem>>, %arg2: memref<16xi32, #tpu.memory_space<smem>>, %arg3: memref<16xf32, #tpu.memory_space<smem>>, %arg4: memref<16xf32, #tpu.memory_space<smem>>) -> (i32, i32) {
    %c0_i32 = arith.constant 0 : i32
    %c0_i32_0 = arith.constant 0 : i32
    %c0_i32_1 = arith.constant 0 : i32
    return %c0_i32, %c0_i32_0 : i32, i32
  }
  func.func @transform_2(%arg0: i32, %arg1: memref<16xi32, #tpu.memory_space<smem>>, %arg2: memref<16xi32, #tpu.memory_space<smem>>, %arg3: memref<16xf32, #tpu.memory_space<smem>>, %arg4: memref<16xf32, #tpu.memory_space<smem>>) -> (i32, i32) {
    %c0_i32 = arith.constant 0 : i32
    %c0_i32_0 = arith.constant 0 : i32
    %c0_i32_1 = arith.constant 0 : i32
    return %c0_i32, %c0_i32_0 : i32, i32
  }
  func.func @transform_3(%arg0: i32, %arg1: memref<16xi32, #tpu.memory_space<smem>>, %arg2: memref<16xi32, #tpu.memory_space<smem>>, %arg3: memref<16xf32, #tpu.memory_space<smem>>, %arg4: memref<16xf32, #tpu.memory_space<smem>>) -> (i32, i32) {
    %c0_i32 = arith.constant 0 : i32
    %c0_i32_0 = arith.constant 0 : i32
    %c0_i32_1 = arith.constant 0 : i32
    return %c0_i32, %c0_i32_0 : i32, i32
  }
  func.func @transform_4(%arg0: i32, %arg1: memref<16xi32, #tpu.memory_space<smem>>, %arg2: memref<16xi32, #tpu.memory_space<smem>>, %arg3: memref<16xf32, #tpu.memory_space<smem>>, %arg4: memref<16xf32, #tpu.memory_space<smem>>) -> (i32, i32, i32) {
    %c0_i32 = arith.constant 0 : i32
    %c0_i32_0 = arith.constant 0 : i32
    %c0_i32_1 = arith.constant 0 : i32
    return %arg0, %c0_i32, %c0_i32_0 : i32, i32, i32
  }
}

</mosaic_0001>

<bundles_post_ra>
// kernel: tpu_custom_call.1
= control target key start
LH: loop header
LB: loop body
LE: loop exit
PB: predicated region body
PF: predicated region fallthrough
CT: control target
= control target key end

     0   :  { %s1567_s11 = smov [#allocation4]   ;;  %s1568_s12 = smov [#allocation5]   ;;  %s1788_s0 = inlined_call_operand.vmem [shape: s32[16], index: 0, kind: input, shape index: {}]   ;;  %s1789_s4 = inlined_call_operand.vmem [shape: bf16[2,4,512], index: 4, kind: input, shape index: {}]   ;;  %s1790_s5 = inlined_call_operand.hbm [shape: bf16[512,256], index: 5, kind: input, shape index: {}]   ;;  %s1791_s6 = inlined_call_operand.vmem [shape: f32[1,256], index: 6, kind: input, shape index: {}]   ;;  %s1792_s7 = inlined_call_operand.vmem [shape: bf16[32,4], index: 7, kind: input, shape index: {}]   ;;  %s1793_s8 = inlined_call_operand.hbm [shape: bf16[2,256,256], index: 8, kind: output, shape index: {}]   ;;  %s1794_s1 = inlined_call_operand.hbm [shape: s32[16], index: 1, kind: input, shape index: {}]   ;;  %s1795_s2 = inlined_call_operand.hbm [shape: f32[16], index: 2, kind: input, shape index: {}]   ;;  %s1796_s3 = inlined_call_operand.hbm [shape: f32[16], index: 3, kind: input, shape index: {}]  }
   0x1   :  { %s14_s29 = sshll.u32 %s1788_s0, 4  ;;  %s19_s10 = sshll.u32 %s1794_s1, 4  ;;  %s15_s29 = int_to_ptr.vmem [resolvable:$true] %s14_s29  ;;  %s20_s10 = int_to_ptr.hbm [resolvable:$true] %s19_s10 }
   0x2   :  { %17 = dma.vmem_to_smem %s15_s29, 16, %s1567_s11, [#allocation3] }
   0x3   :  { %22 = dma.hbm_to_smem %s20_s10, 16, %s1568_s12, [#allocation3] }
   0x4   :  { %s24_s15 = sshll.u32 %s1795_s2, 4  ;;  %s29_s18 = sshll.u32 %s1796_s3, 4  ;;  %s25_s15 = int_to_ptr.hbm [resolvable:$true] %s24_s15  ;;  %s30_s18 = int_to_ptr.hbm [resolvable:$true] %s29_s18 }
   0x5   :  { %s1569_s0 = smov [#allocation6]   ;;  %s1570_s19 = smov [#allocation7]  }
   0x6   :  { %27 = dma.hbm_to_smem %s25_s15, 16, %s1569_s0, [#allocation3] }
   0x7   :  { %32 = dma.hbm_to_smem %s30_s18, 16, %s1570_s19, [#allocation3] }
   0x8   :  { %1537 = dma.done.wait [#allocation3], 64 }
   0x9   :  { %1538 = vsyncadd [#allocation3], 4294967232 }
   0xa   :  { %35 = sfence }
   0xb   :  { %36 = vsyncpa [#allocation9], 0 }
   0xc   :  { %37 = vsyncpa [#allocation10], 0 }
   0xd   :  { %39 = vsyncpa [#allocation10 + $0x1], 0  ;;  %s1633_s1 = smov 0   ;;  %s1635_s20 = smov 0  }
   0xe   :  { %s1637_s2 = smov 0   ;;  %s1639_s21 = smov 0  }
   0xf LB: > { %s1654_s3 = sadd.s32 4294967295, %s1561_s21   ;;  %s981_s22 = sadd.s32 4294967294, %s1561_s21   ;;  %s1561_s21 = sphi %s1639_s21, %s1802_s21   ;;  %s1557_s2 = sphi %s1637_s2, %s1801_s2   ;;  %s1553_s20 = sphi %s1635_s20, %s1800_s20   ;;  %s1549_s1 = sphi %s1633_s1, %s1799_s1  }
  0x10   : > { %s1658_s23 = sadd.s32 1, %s1561_s21   ;;  %s141_s24 = sadd.s32 1, %s1557_s2 }
  0x11   : > { %s138_s25 = ssub.s32 %s1561_s21, %s1658_s23  ;;  %p151_p0 = scmp.ne.s32.totalorder %s1557_s2, %s1553_s20 }
  0x12   : > { %p139_p1 = scmp.eq.s32.totalorder %s138_s25, 0  ;;  %p152_p2 = scmp.eq.s32.totalorder %s1654_s3, 1 }
  0x13   : > { %p157_p3 = scmp.ne.s32.totalorder %s1553_s20, %s1549_s1  ;;  %p158_p4 = scmp.eq.s32.totalorder %s981_s22, 1 }
  0x14   : > { %s1669_s26 = scalar_select %p139_p1, %s1557_s2, %s141_s24  }
  0x15   : > { %p1671_p5 = por %p152_p2, %p151_p0  ;;  %p1675_p6 = por %p158_p4, %p157_p3 }
  0x16   : > { %p982_p7 = scmp.ge.s32.totalorder %s1561_s21, 1  ;;  %p165_p8 = scmp.lt.s32.totalorder %s1561_s21, 3 }
  0x17   : > { %p1359_p9 = scmp.eq.s32.totalorder %s1654_s3, 0  ;;  %s176_s9 = sshll.u32 %s1790_s5, 4  ;;  %s177_s9 = int_to_ptr.hbm [resolvable:$true] %s176_s9 }
  0x18   : > { %p166_p10 = pnand %p982_p7, %p165_p8  ;;  %s1571_s10 = smov [#allocation8]  }
  0x19   : > { %s178_s11 = sshll.u32 %s1571_s10, 4  ;;  %s1572_s12 = smov 128   ;;  %s179_s11 = int_to_ptr.vmem [resolvable:$true] %s178_s11 }
  0x1a   : > { %p1351_p11 = pneg %p166_p10  ;;  %s1573_s13 = smov 8  }
  0x1b   : > { %208 = sbr.rel (%p166_p10) target bundleno = 410 (0x19a), region = 36 }
  0x1c   : > { %p1352_p12 = pnand %p1359_p9, %p1351_p11 }
  0x1e   : > { %1354 = dma.hbm_to_vmem [thread:$0]  (!%p1352_p12), %s177_s9, 8192, %s179_s11, [#allocation9], %s1572_s12, %s1572_s12, %s1573_s13  }
  0x20   : > { %1540 = dma.done.wait (%p1359_p9), [#allocation9], 8192  }
  0x21   : > { %1542 = vsyncadd (%p1359_p9), [#allocation9], 4294959104  ;;  %s232_s14 = sand.u32 1, %s1553_s20   ;;  %v1048_v0 = vld [vmem:[#allocation8 + $0x70] sm:$0xf]  ;;  %p235_p13 = scmp.lt.s32.totalorder %s1654_s3, 1 }
  0x22   : > { %s1694_s15 = sshll.u32 %s232_s14, 8  ;;  %v1288_v1 = vld [vmem:[#allocation8 + $0x74] sm:$0xf0]  ;;  %v1112_v2 = vld [vmem:[#allocation8 + $0xf0] sm:$0xf]  ;;  %vm769_vm0 = vcmask 1041408  }
  0x23   : > { %v1049_v3 = vor.u32 %v1288_v1, %v1048_v0  ;;  %v1304_v4 = vld [vmem:[#allocation8 + $0xf4] sm:$0xf0]  ;;  %v1176_v5 = vld [vmem:[#allocation8 + $0x170] sm:$0xf]  ;;  %v1040_v11 = vld [vmem:[#allocation8 + $0x60] sm:$0xf] }
  0x24   : > { %v1320_v6 = vld [vmem:[#allocation8 + $0x174] sm:$0xf0]  ;;  %v1113_v7 = vor.u32 %v1304_v4, %v1112_v2  ;;  %v1240_v9 = vld [vmem:[#allocation8 + $0x1f0] sm:$0xf]  ;;  %v1286_v13 = vld [vmem:[#allocation8 + $0x64] sm:$0xf0] }
  0x25   : > { %v1177_v8 = vor.u32 %v1320_v6, %v1176_v5  ;;  %v1336_v10 = vld [vmem:[#allocation8 + $0x1f4] sm:$0xf0]  ;;  %642 = vmatpush.bf16.msra.mxu0 %v1049_v3  ;;  %v1104_v14 = vld [vmem:[#allocation8 + $0xe0] sm:$0xf]  ;;  %v1302_v15 = vld [vmem:[#allocation8 + $0xe4] sm:$0xf0]  ;;  %v1041_v16 = vor.u32 %v1286_v13, %v1040_v11 }
  0x26   : > { %v1241_v12 = vor.u32 %v1336_v10, %v1240_v9  ;;  %655 = vmatpush.bf16.msra.mxu1 %v1113_v7  ;;  %v1105_v17 = vor.u32 %v1302_v15, %v1104_v14  ;;  %v1168_v18 = vld [vmem:[#allocation8 + $0x160] sm:$0xf]  ;;  %v1318_v19 = vld [vmem:[#allocation8 + $0x164] sm:$0xf0]  ;;  %v1032_v23 = vld [vmem:[#allocation8 + $0x50] sm:$0xf] }
  0x27   : > { %668 = vmatpush.bf16.msra.mxu2 %v1177_v8  ;;  %v1232_v20 = vld [vmem:[#allocation8 + $0x1e0] sm:$0xf]  ;;  %v1169_v21 = vor.u32 %v1318_v19, %v1168_v18  ;;  %v1334_v22 = vld [vmem:[#allocation8 + $0x1e4] sm:$0xf0]  ;;  %v1284_v24 = vld [vmem:[#allocation8 + $0x54] sm:$0xf0] }
  0x28   : > { %681 = vmatpush.bf16.msra.mxu3 %v1241_v12  ;;  %v1233_v25 = vor.u32 %v1334_v22, %v1232_v20  ;;  %v1096_v26 = vld [vmem:[#allocation8 + $0xd0] sm:$0xf]  ;;  %v1300_v27 = vld [vmem:[#allocation8 + $0xd4] sm:$0xf0]  ;;  %v1033_v29 = vor.u32 %v1284_v24, %v1032_v23  ;;  %v1024_v35 = vld [vmem:[#allocation8 + $0x40] sm:$0xf] }
  0x29   : > { %v1160_v28 = vld [vmem:[#allocation8 + $0x150] sm:$0xf]  ;;  %643 = vmatpush.bf16.msra.mxu0 %v1041_v16  ;;  %v1316_v30 = vld [vmem:[#allocation8 + $0x154] sm:$0xf0]  ;;  %v1097_v33 = vor.u32 %v1300_v27, %v1096_v26  ;;  %v1282_v36 = vld [vmem:[#allocation8 + $0x44] sm:$0xf0] }
  0x2a   : > { %v1224_v31 = vld [vmem:[#allocation8 + $0x1d0] sm:$0xf]  ;;  %v1332_v32 = vld [vmem:[#allocation8 + $0x1d4] sm:$0xf0]  ;;  %656 = vmatpush.bf16.msra.mxu1 %v1105_v17  ;;  %v1161_v34 = vor.u32 %v1316_v30, %v1160_v28  ;;  %v1088_v37 = vld [vmem:[#allocation8 + $0xc0] sm:$0xf]  ;;  %v1025_v44 = vor.u32 %v1282_v36, %v1024_v35 }
  0x2b   : > { %669 = vmatpush.bf16.msra.mxu2 %v1169_v21  ;;  %v1225_v38 = vor.u32 %v1332_v32, %v1224_v31  ;;  %v1298_v39 = vld [vmem:[#allocation8 + $0xc4] sm:$0xf0]  ;;  %v1152_v40 = vld [vmem:[#allocation8 + $0x140] sm:$0xf]  ;;  %v1016_v47 = vld [vmem:[#allocation8 + $0x30] sm:$0xf] }
  0x2c   : > { %682 = vmatpush.bf16.msra.mxu3 %v1233_v25  ;;  %v1314_v41 = vld [vmem:[#allocation8 + $0x144] sm:$0xf0]  ;;  %v1216_v42 = vld [vmem:[#allocation8 + $0x1c0] sm:$0xf]  ;;  %v1089_v45 = vor.u32 %v1298_v39, %v1088_v37  ;;  %v1280_v48 = vld [vmem:[#allocation8 + $0x34] sm:$0xf0] }
  0x2d   : > { %v1330_v43 = vld [vmem:[#allocation8 + $0x1c4] sm:$0xf0]  ;;  %644 = vmatpush.bf16.msra.mxu0 %v1033_v29  ;;  %v1153_v46 = vor.u32 %v1314_v41, %v1152_v40  ;;  %v1080_v49 = vld [vmem:[#allocation8 + $0xb0] sm:$0xf]  ;;  %v1296_v51 = vld [vmem:[#allocation8 + $0xb4] sm:$0xf0]  ;;  %v1017_v56 = vor.u32 %v1280_v48, %v1016_v47 }
  0x2e   : > { %657 = vmatpush.bf16.msra.mxu1 %v1097_v33  ;;  %v1217_v50 = vor.u32 %v1330_v43, %v1216_v42  ;;  %v1144_v52 = vld [vmem:[#allocation8 + $0x130] sm:$0xf]  ;;  %v1312_v53 = vld [vmem:[#allocation8 + $0x134] sm:$0xf0]  ;;  %s1700_s16 = scalar_select %p235_p13, %s1654_s3, 1  ;;  %v1081_v57 = vor.u32 %v1296_v51, %v1080_v49  ;;  %vm762_vm1 = vcmask 31744  }
  0x2f   : > { %670 = vmatpush.bf16.msra.mxu2 %v1161_v34  ;;  %v1208_v54 = vld [vmem:[#allocation8 + $0x1b0] sm:$0xf]  ;;  %v1328_v55 = vld [vmem:[#allocation8 + $0x1b4] sm:$0xf0]  ;;  %v1145_v58 = vor.u32 %v1312_v53, %v1144_v52  ;;  %v1008_v59 = vld [vmem:[#allocation8 + $0x20] sm:$0xf] }
  0x30   : > { %683 = vmatpush.bf16.msra.mxu3 %v1225_v38  ;;  %v1278_v60 = vld [vmem:[#allocation8 + $0x24] sm:$0xf0]  ;;  %v1072_v61 = vld [vmem:[#allocation8 + $0xa0] sm:$0xf]  ;;  %v1209_v62 = vor.u32 %v1328_v55, %v1208_v54  ;;  %s1272_s17 = sshll.u32 %s1700_s16, 3  ;;  %s234_s10 = scalar_lea.vmem [#allocation11], %s1694_s15 }
  0x31   : > { %645 = vmatpush.bf16.msra.mxu0 %v1025_v44  ;;  %v1294_v63 = vld [vmem:[#allocation8 + $0xa4] sm:$0xf0]  ;;  %v1136_v0 = vld [vmem:[#allocation8 + $0x120] sm:$0xf]  ;;  %v1009_v4 = vor.u32 %v1278_v60, %v1008_v59  ;;  %v1000_v7 = vld [vmem:[#allocation8 + $0x10] sm:$0xf]  ;;  %s239_s19 = scalar_lea.vmem %s1789_s4, %s1272_s17 }
  0x32   : > { %658 = vmatpush.bf16.msra.mxu1 %v1089_v45  ;;  %v1310_v1 = vld [vmem:[#allocation8 + $0x124] sm:$0xf0]  ;;  %v1200_v2 = vld [vmem:[#allocation8 + $0x1a0] sm:$0xf]  ;;  %v1073_v5 = vor.u32 %v1294_v63, %v1072_v61  ;;  %v1276_v8 = vld [vmem:[#allocation8 + $0x14] sm:$0xf0] }
  0x33   : > { %671 = vmatpush.bf16.msra.mxu2 %v1153_v46  ;;  %v1326_v3 = vld [vmem:[#allocation8 + $0x1a4] sm:$0xf0]  ;;  %v1137_v6 = vor.u32 %v1310_v1, %v1136_v0  ;;  %v1064_v9 = vld [vmem:[#allocation8 + $0x90] sm:$0xf]  ;;  %v1292_v11 = vld [vmem:[#allocation8 + $0x94] sm:$0xf0]  ;;  %v1001_v17 = vor.u32 %v1276_v8, %v1000_v7 }
  0x34   : > { %684 = vmatpush.bf16.msra.mxu3 %v1217_v50  ;;  %v1201_v10 = vor.u32 %v1326_v3, %v1200_v2  ;;  %v1128_v12 = vld [vmem:[#allocation8 + $0x110] sm:$0xf]  ;;  %v1308_v13 = vld [vmem:[#allocation8 + $0x114] sm:$0xf0]  ;;  %v992_v16 = vld [vmem:[#allocation8] sm:$0xf]  ;;  %v1065_v21 = vor.u32 %v1292_v11, %v1064_v9 }
  0x35   : > { %646 = vmatpush.bf16.msra.mxu0 %v1017_v56  ;;  %v1192_v14 = vld [vmem:[#allocation8 + $0x190] sm:$0xf]  ;;  %v1324_v15 = vld [vmem:[#allocation8 + $0x194] sm:$0xf0]  ;;  %v1274_v18 = vld [vmem:[#allocation8 + $0x4] sm:$0xf0]  ;;  %v1129_v22 = vor.u32 %v1308_v13, %v1128_v12 }
  0x36   : > { %659 = vmatpush.bf16.msra.mxu1 %v1081_v57  ;;  %v1056_v19 = vld [vmem:[#allocation8 + $0x80] sm:$0xf]  ;;  %v1290_v20 = vld [vmem:[#allocation8 + $0x84] sm:$0xf0]  ;;  %v1193_v26 = vor.u32 %v1324_v15, %v1192_v14  ;;  %v1287_v28 = vld [vmem:[#allocation8 + $0x74] sm:$0xf]  ;;  %v993_v33 = vor.u32 %v1274_v18, %v992_v16 }
  0x37   : > { %672 = vmatpush.bf16.msra.mxu2 %v1145_v58  ;;  %v1120_v23 = vld [vmem:[#allocation8 + $0x100] sm:$0xf]  ;;  %v1306_v24 = vld [vmem:[#allocation8 + $0x104] sm:$0xf0]  ;;  %v1050_v29 = vld [vmem:[#allocation8 + $0x78] sm:$0xf0]  ;;  %v1057_v36 = vor.u32 %v1290_v20, %v1056_v19 }
  0x38   : > { %685 = vmatpush.bf16.msra.mxu3 %v1209_v62  ;;  %v1184_v25 = vld [vmem:[#allocation8 + $0x180] sm:$0xf]  ;;  %v1322_v27 = vld [vmem:[#allocation8 + $0x184] sm:$0xf0]  ;;  %v1303_v30 = vld [vmem:[#allocation8 + $0xf4] sm:$0xf]  ;;  %v1121_v37 = vor.u32 %v1306_v24, %v1120_v23  ;;  %v1053_v41 = vor.u32 %v1287_v28, %v1050_v29 }
  0x39   : > { %647 = vmatpush.bf16.msra.mxu0 %v1009_v4  ;;  %v1114_v31 = vld [vmem:[#allocation8 + $0xf8] sm:$0xf0]  ;;  %v1319_v34 = vld [vmem:[#allocation8 + $0x174] sm:$0xf]  ;;  %v1185_v40 = vor.u32 %v1322_v27, %v1184_v25  ;;  %v1285_v42 = vld [vmem:[#allocation8 + $0x64] sm:$0xf] }
  0x3a   : > { %660 = vmatpush.bf16.msra.mxu1 %v1073_v5  ;;  %v241_v32 = vld [vmem:[%s239_s19] sm:$0xff]  ;;  %v1335_v38 = vld [vmem:[#allocation8 + $0x1f4] sm:$0xf]  ;;  %v1117_v43 = vor.u32 %v1303_v30, %v1114_v31  ;;  %v1042_v45 = vld [vmem:[#allocation8 + $0x68] sm:$0xf0]  ;;  %s1738_s11 = smov 0  }
  0x3b   : > { %673 = vmatpush.bf16.msra.mxu2 %v1137_v6  ;;  %v1178_v35 = vld [vmem:[#allocation8 + $0x178] sm:$0xf0]  ;;  %313 = vst [vmem:[#allocation1] ss:$4 sm:$0xff] %v241_v32  ;;  %v1301_v46 = vld [vmem:[#allocation8 + $0xe4] sm:$0xf]  ;;  %v1045_v55 = vor.u32 %v1285_v42, %v1042_v45 }
  0x3c   : > { %686 = vmatpush.bf16.msra.mxu3 %v1201_v10  ;;  %v1242_v39 = vld [vmem:[#allocation8 + $0x1f8] sm:$0xf0]  ;;  %v1181_v44 = vor.u32 %v1319_v34, %v1178_v35  ;;  %v1106_v47 = vld [vmem:[#allocation8 + $0xe8] sm:$0xf0]  ;;  %v1317_v49 = vld [vmem:[#allocation8 + $0x164] sm:$0xf] }
  0x3d   : > { %648 = vmatpush.bf16.msra.mxu0 %v1001_v17  ;;  %v1245_v48 = vor.u32 %v1335_v38, %v1242_v39  ;;  %v1170_v50 = vld [vmem:[#allocation8 + $0x168] sm:$0xf0]  ;;  %v1333_v51 = vld [vmem:[#allocation8 + $0x1e4] sm:$0xf]  ;;  %v1283_v53 = vld [vmem:[#allocation8 + $0x54] sm:$0xf]  ;;  %v1109_v60 = vor.u32 %v1301_v46, %v1106_v47 }
  0x3e   : > { %661 = vmatpush.bf16.msra.mxu1 %v1065_v21  ;;  %v1234_v52 = vld [vmem:[#allocation8 + $0x1e8] sm:$0xf0]  ;;  %v1034_v54 = vld [vmem:[#allocation8 + $0x58] sm:$0xf0]  ;;  %v1299_v56 = vld [vmem:[#allocation8 + $0xd4] sm:$0xf]  ;;  %v1173_v61 = vor.u32 %v1317_v49, %v1170_v50 }
  0x3f   : > { %674 = vmatpush.bf16.msra.mxu2 %v1129_v22  ;;  %v1098_v57 = vld [vmem:[#allocation8 + $0xd8] sm:$0xf0]  ;;  %v1315_v58 = vld [vmem:[#allocation8 + $0x154] sm:$0xf]  ;;  %v1237_v0 = vor.u32 %v1333_v51, %v1234_v52  ;;  %v1037_v5 = vor.u32 %v1283_v53, %v1034_v54  ;;  %v1281_v8 = vld [vmem:[#allocation8 + $0x44] sm:$0xf] }
  0x40   : > { %687 = vmatpush.bf16.msra.mxu3 %v1193_v26  ;;  %v1162_v59 = vld [vmem:[#allocation8 + $0x158] sm:$0xf0]  ;;  %v1331_v3 = vld [vmem:[#allocation8 + $0x1d4] sm:$0xf]  ;;  %v1101_v6 = vor.u32 %v1299_v56, %v1098_v57  ;;  %v1026_v9 = vld [vmem:[#allocation8 + $0x48] sm:$0xf0] }
  0x41   : > { %649 = vmatpush.bf16.msra.mxu0 %v993_v33  ;;  %v1226_v4 = vld [vmem:[#allocation8 + $0x1d8] sm:$0xf0]  ;;  %v1165_v7 = vor.u32 %v1315_v58, %v1162_v59  ;;  %v1297_v10 = vld [vmem:[#allocation8 + $0xc4] sm:$0xf]  ;;  %v1090_v12 = vld [vmem:[#allocation8 + $0xc8] sm:$0xf0]  ;;  %v1029_v17 = vor.u32 %v1281_v8, %v1026_v9 }
  0x42   : > { %662 = vmatpush.bf16.msra.mxu1 %v1057_v36  ;;  %v1706_v62 = vld.sshfl [vmem:[#allocation1 + $0x10] sm:$0xff pattern:$0x73625140]  ;;  %v1708_v63 = vld.sshfl [vmem:[#allocation1] sm:$0xff pattern:$0x73625140]  ;;  %v1229_v11 = vor.u32 %v1331_v3, %v1226_v4  ;;  %v1093_v18 = vor.u32 %v1297_v10, %v1090_v12 }
  0x43   : > { %675 = vmatpush.bf16.msra.mxu2 %v1121_v37  ;;  %v1711_v1 = vld.sshfl [vmem:[#allocation1 + $0x18] sm:$0xff pattern:$0x73625140]  ;;  %v1713_v2 = vld.sshfl [vmem:[#allocation1 + $0x8] sm:$0xff pattern:$0x73625140] }
  0x44   : > { %688 = vmatpush.bf16.msra.mxu3 %v1185_v40  ;;  %650 = vmatmul.bf16.vlgmr.msra.gmra.mxu0 %v1708_v63  ;;  %v1313_v13 = vld [vmem:[#allocation8 + $0x144] sm:$0xf]  ;;  %v1154_v14 = vld [vmem:[#allocation8 + $0x148] sm:$0xf0]  ;;  %v1279_v20 = vld [vmem:[#allocation8 + $0x34] sm:$0xf] }
  0x45   : > { %694 = vmatpush.bf16.msrb.mxu0 %v1053_v41  ;;  %663 = vmatmul.bf16.vlgmr.msra.gmra.mxu1 %v1713_v2  ;;  %v1329_v15 = vld [vmem:[#allocation8 + $0x1c4] sm:$0xf]  ;;  %v1218_v16 = vld [vmem:[#allocation8 + $0x1c8] sm:$0xf0]  ;;  %v1157_v19 = vor.u32 %v1313_v13, %v1154_v14  ;;  %v1018_v21 = vld [vmem:[#allocation8 + $0x38] sm:$0xf0] }
  0x46   : > { %707 = vmatpush.bf16.msrb.mxu1 %v1117_v43  ;;  %676 = vmatmul.bf16.vlgmr.msra.gmra.mxu2 %v1706_v62  ;;  %v1295_v22 = vld [vmem:[#allocation8 + $0xb4] sm:$0xf]  ;;  %v1221_v23 = vor.u32 %v1329_v15, %v1218_v16  ;;  %v1082_v24 = vld [vmem:[#allocation8 + $0xb8] sm:$0xf0]  ;;  %v1021_v29 = vor.u32 %v1279_v20, %v1018_v21  ;;  %v1277_v32 = vld [vmem:[#allocation8 + $0x24] sm:$0xf] }
  0x47   : > { %720 = vmatpush.bf16.msrb.mxu2 %v1181_v44  ;;  %689 = vmatmul.bf16.vlgmr.msra.gmra.mxu3 %v1711_v1  ;;  %v1311_v25 = vld [vmem:[#allocation8 + $0x134] sm:$0xf]  ;;  %v1146_v26 = vld [vmem:[#allocation8 + $0x138] sm:$0xf0]  ;;  %v1085_v30 = vor.u32 %v1295_v22, %v1082_v24  ;;  %v1010_v33 = vld [vmem:[#allocation8 + $0x28] sm:$0xf0] }
  0x48   : > { %733 = vmatpush.bf16.msrb.mxu3 %v1245_v48  ;;  %v1327_v27 = vld [vmem:[#allocation8 + $0x1b4] sm:$0xf]  ;;  %v1210_v28 = vld [vmem:[#allocation8 + $0x1b8] sm:$0xf0]  ;;  %v1149_v31 = vor.u32 %v1311_v25, %v1146_v26  ;;  %v1293_v34 = vld [vmem:[#allocation8 + $0xa4] sm:$0xf]  ;;  %v1013_v41 = vor.u32 %v1277_v32, %v1010_v33 }
  0x49   : > { %695 = vmatpush.bf16.msrb.mxu0 %v1045_v55  ;;  %v1213_v35 = vor.u32 %v1327_v27, %v1210_v28  ;;  %v1074_v36 = vld [vmem:[#allocation8 + $0xa8] sm:$0xf0]  ;;  %v1309_v37 = vld [vmem:[#allocation8 + $0x124] sm:$0xf]  ;;  %v1275_v44 = vld [vmem:[#allocation8 + $0x14] sm:$0xf] }
  0x4a   : > { %708 = vmatpush.bf16.msrb.mxu1 %v1109_v60  ;;  %v1138_v38 = vld [vmem:[#allocation8 + $0x128] sm:$0xf0]  ;;  %v1325_v39 = vld [vmem:[#allocation8 + $0x1a4] sm:$0xf]  ;;  %v1077_v42 = vor.u32 %v1293_v34, %v1074_v36  ;;  %v1002_v45 = vld [vmem:[#allocation8 + $0x18] sm:$0xf0] }
  0x4b   : > { %721 = vmatpush.bf16.msrb.mxu2 %v1173_v61  ;;  %v1202_v40 = vld [vmem:[#allocation8 + $0x1a8] sm:$0xf0]  ;;  %v1141_v43 = vor.u32 %v1309_v37, %v1138_v38  ;;  %v1291_v46 = vld [vmem:[#allocation8 + $0x94] sm:$0xf]  ;;  %v1066_v48 = vld [vmem:[#allocation8 + $0x98] sm:$0xf0]  ;;  %v1005_v53 = vor.u32 %v1275_v44, %v1002_v45 }
  0x4c   : > { %734 = vmatpush.bf16.msrb.mxu3 %v1237_v0  ;;  %v1205_v47 = vor.u32 %v1325_v39, %v1202_v40  ;;  %v1307_v49 = vld [vmem:[#allocation8 + $0x114] sm:$0xf]  ;;  %v1130_v50 = vld [vmem:[#allocation8 + $0x118] sm:$0xf0]  ;;  %v1069_v54 = vor.u32 %v1291_v46, %v1066_v48  ;;  %v1273_v56 = vld [vmem:[#allocation8 + $0x4] sm:$0xf] }
  0x4d   : > { %696 = vmatpush.bf16.msrb.mxu0 %v1037_v5  ;;  %v1323_v51 = vld [vmem:[#allocation8 + $0x194] sm:$0xf]  ;;  %v1194_v52 = vld [vmem:[#allocation8 + $0x198] sm:$0xf0]  ;;  %v1133_v55 = vor.u32 %v1307_v49, %v1130_v50  ;;  %v994_v57 = vld [vmem:[#allocation8 + $0x8] sm:$0xf0] }
  0x4e   : > { %709 = vmatpush.bf16.msrb.mxu1 %v1101_v6  ;;  %v1289_v58 = vld [vmem:[#allocation8 + $0x84] sm:$0xf]  ;;  %v1197_v59 = vor.u32 %v1323_v51, %v1194_v52  ;;  %v1058_v60 = vld [vmem:[#allocation8 + $0x88] sm:$0xf0]  ;;  %v997_v5 = vor.u32 %v1273_v56, %v994_v57  ;;  %v306_v9 = vld [vmem:[%s1791_s6] sm:$0x3] }
  0x4f   : > { %722 = vmatpush.bf16.msrb.mxu2 %v1165_v7  ;;  %v1305_v61 = vld [vmem:[#allocation8 + $0x104] sm:$0xf]  ;;  %v1122_v0 = vld [vmem:[#allocation8 + $0x108] sm:$0xf0]  ;;  %v1061_v6 = vor.u32 %v1289_v58, %v1058_v60  ;;  %v308_v10 = vperm.slane %v306_v9, 0  ;;  %v1337_v20 = vld [vmem:[%s1792_s7] sm:$0xff] }
  0x50   : > { %735 = vmatpush.bf16.msrb.mxu3 %v1229_v11  ;;  %v1321_v3 = vld [vmem:[#allocation8 + $0x184] sm:$0xf]  ;;  %v1186_v4 = vld [vmem:[#allocation8 + $0x188] sm:$0xf0]  ;;  %v1125_v7 = vor.u32 %v1305_v61, %v1122_v0 }
  0x51   : > { %697 = vmatpush.bf16.msrb.mxu0 %v1029_v17  ;;  %v1189_v8 = vor.u32 %v1321_v3, %v1186_v4 }
  0x52   : > { %710 = vmatpush.bf16.msrb.mxu1 %v1093_v18 }
  0x53   : > { %723 = vmatpush.bf16.msrb.mxu2 %v1157_v19 }
  0x54   : > { %736 = vmatpush.bf16.msrb.mxu3 %v1221_v23  ;;  %v309_v23 = vperm.slane %v306_v9, 1 }
  0x55   : > { %698 = vmatpush.bf16.msrb.mxu0 %v1021_v29 }
  0x56   : > { %711 = vmatpush.bf16.msrb.mxu1 %v1085_v30 }
  0x57   : > { %724 = vmatpush.bf16.msrb.mxu2 %v1149_v31 }
  0x58   : > { %737 = vmatpush.bf16.msrb.mxu3 %v1213_v35 }
  0x59   : > { %699 = vmatpush.bf16.msrb.mxu0 %v1013_v41 }
  0x5a   : > { %712 = vmatpush.bf16.msrb.mxu1 %v1077_v42 }
  0x5b   : > { %725 = vmatpush.bf16.msrb.mxu2 %v1141_v43 }
  0x5c   : > { %738 = vmatpush.bf16.msrb.mxu3 %v1205_v47 }
  0x5d   : > { %700 = vmatpush.bf16.msrb.mxu0 %v1005_v53 }
  0x5e   : > { %713 = vmatpush.bf16.msrb.mxu1 %v1069_v54 }
  0x5f   : > { %726 = vmatpush.bf16.msrb.mxu2 %v1133_v55 }
  0x60   : > { %739 = vmatpush.bf16.msrb.mxu3 %v1197_v59 }
  0x61   : > { %701 = vmatpush.bf16.msrb.mxu0 %v997_v5 }
  0x62   : > { %714 = vmatpush.bf16.msrb.mxu1 %v1061_v6 }
  0x63   : > { %727 = vmatpush.bf16.msrb.mxu2 %v1125_v7 }
  0x64   : > { %740 = vmatpush.bf16.msrb.mxu3 %v1189_v8  ;;  %702 = vmatmul.bf16.vlgmr.msrb.gmra.mxu0 %v1708_v63 }
  0x65   : > { %715 = vmatmul.bf16.vlgmr.msrb.gmra.mxu1 %v1713_v2 }
  0x66   : > { %728 = vmatmul.bf16.vlgmr.msrb.gmra.mxu2 %v1706_v62 }
  0x67   : > { %741 = vmatmul.bf16.vlgmr.msrb.gmra.mxu3 %v1711_v1  ;;  %v1338_v1 = vld [vmem:[%s1792_s7 + $0x8] sm:$0xff] }
  0xc1   : > { %v651_v11 = vpop.f32.mrf.mxu0 }
  0xc2   : > { %v652_v12 = vadd.f32 %v651_v11, %v308_v10  ;;  %v664_v13 = vpop.f32.mrf.mxu1 }
  0xc4   : > { %v665_v14 = vadd.f32 %v664_v13, %v652_v12 }
  0xc9   : > { %v677_v15 = vpop.f32.mrf.mxu2  ;;  %v653_v63 = vpop.f32.mrf.mxu0 }
  0xca   : > { %v678_v16 = vadd.f32 %v677_v15, %v665_v14  ;;  %v690_v17 = vpop.f32.mrf.mxu3  ;;  %v666_v2 = vpop.f32.mrf.mxu1 }
  0xcc   : > { %v691_v18 = vadd.f32 %v690_v17, %v678_v16 }
  0xce   : > { %v746_v19 = vpack.c.bf16 %v691_v18, %v691_v18 }
  0xd0   : > { %v771_v62 = vsel %vm769_vm0, %v746_v19, 0 }
  0xd1   : > { %v679_v21 = vpop.f32.mrf.mxu2  ;;  %783 = vmatpush.bf16.msra.mxu0 %v771_v62  ;;  %1343 = vmatpush.bf16.msra.mxu2 %v771_v62 }
  0xd2   : > { %v692_v22 = vpop.f32.mrf.mxu3 }
  0xd4   : > { %1255 = vmatmul.msk.bf16.vlgmr.msra.gmra.mxu2 %vm762_vm1, %v1338_v1  ;;  %1254 = vmatmul.msk.bf16.vlgmr.msra.gmra.mxu0 %vm762_vm1, %v1337_v20 }
  0xe1   : > { %v703_v24 = vpop.f32.mrf.mxu0 }
  0xe2   : > { %v704_v25 = vadd.f32 %v703_v24, %v309_v23  ;;  %v716_v26 = vpop.f32.mrf.mxu1 }
  0xe4   : > { %v717_v27 = vadd.f32 %v716_v26, %v704_v25 }
  0xe9   : > { %v729_v28 = vpop.f32.mrf.mxu2  ;;  %v705_v31 = vpop.f32.mrf.mxu0 }
  0xea   : > { %v730_v29 = vadd.f32 %v729_v28, %v717_v27  ;;  %v742_v30 = vpop.f32.mrf.mxu3  ;;  %v718_v32 = vpop.f32.mrf.mxu1 }
  0xec   : > { %v743_v33 = vadd.f32 %v742_v30, %v730_v29 }
  0xee   : > { %v747_v34 = vpack.c.bf16 %v743_v33, %v743_v33 }
  0xf0   : > { %v774_v35 = vsel %vm769_vm0, %v747_v34, 0 }
  0xf1   : > { %v731_v36 = vpop.f32.mrf.mxu2  ;;  %802 = vmatpush.bf16.msra.mxu1 %v774_v35  ;;  %1344 = vmatpush.bf16.msra.mxu3 %v774_v35 }
  0xf2   : > { %v744_v37 = vpop.f32.mrf.mxu3 }
  0xf4   : > { %1257 = vmatmul.msk.bf16.vlgmr.msra.gmra.mxu3 %vm762_vm1, %v1338_v1  ;;  %1256 = vmatmul.msk.bf16.vlgmr.msra.gmra.mxu1 %vm762_vm1, %v1337_v20 }
 0x151   : > { %v785_v38 = vpop.f32.mrf.mxu0 }
 0x157   : > { %v790_v41 = vpop.f32.mrf.mxu2 }
 0x159   : > { %v787_v44 = vpop.f32.mrf.mxu0 }
 0x15f   : > { %v792_v47 = vpop.f32.mrf.mxu2 }
 0x171   : > { %v804_v39 = vpop.f32.mrf.mxu1 }
 0x172   : > { %v814_v40 = vpack.c.bf16 %v804_v39, %v785_v38 }
 0x174   : > { %818 = vst [vmem:[#allocation2] sm:$0xff] %v814_v40 }
 0x177   : > { %v809_v42 = vpop.f32.mrf.mxu3 }
 0x178   : > { %v816_v43 = vpack.c.bf16 %v809_v42, %v790_v41 }
 0x179   : > { %v806_v45 = vpop.f32.mrf.mxu1 }
 0x17a   : > { %820 = vst [vmem:[#allocation2 + $0x10] sm:$0xff] %v816_v43  ;;  %v815_v46 = vpack.c.bf16 %v806_v45, %v787_v44 }
 0x17c   : > { %819 = vst [vmem:[#allocation2 + $0x8] sm:$0xff] %v815_v46 }
 0x17f   : > { %v811_v48 = vpop.f32.mrf.mxu3 }
 0x180   : > { %v817_v49 = vpack.c.bf16 %v811_v48, %v792_v47 }
 0x182   : > { %821 = vst [vmem:[#allocation2 + $0x18] sm:$0xff] %v817_v49 }
 0x183 LB: >> { %s828_s12 = sld [smem:[#allocation4 + %s1565_s11]]  ;;  %s1264_s24 = sshll.u32 %s1565_s11, 4  ;;  %s1565_s11 = sphi %s1738_s11, %s827_s11  }
 0x184   : >> { %s830_s13 = sld [smem:[#allocation5 + %s1565_s11]]  ;;  %s877_s25 = scalar_lea.vmem %s234_s10, %s1264_s24 [#allocation11] }
 0x185   : >> { %s832_s16 = sld [smem:[#allocation6 + %s1565_s11]] }
 0x186   : >> { %s849_s17 = sld [smem:[#allocation7 + %s1565_s11]]  ;;  %s827_s11 = sadd.s32 1, %s1565_s11  }
 0x187   : >> { %p824_p0 = scmp.ge.s32.totalorder %s827_s11, 16  }
 0x188   : > { %s1342_s29 = sshll.u32 (%p824_p0), %s1654_s3, 8 }
 0x189   : >> { %s1258_s18 = sshll.u32 %s828_s12, 4  ;;  %s892_s12 = scalar_lea.hbm (%p824_p0), %s1793_s8, %s1342_s29 }
 0x18a   : >> { %s1259_s0 = sshll.u32 %s830_s13, 4  ;;  %s837_s19 = scalar_lea.vmem [#allocation2], %s1258_s18 }
 0x18b   : >> { %v838_v50 = vld [vmem:[%s837_s19] sm:$0xff]  ;;  %v844_v51 = vstv %s832_s16  ;;  %v839_v52 = vld [vmem:[%s837_s19 + $0x8] sm:$0xff]  ;;  %s854_s22 = scalar_lea.vmem [#allocation2], %s1259_s0  ;;  %s893_s13 = sshll.u32 (%p824_p0), %s234_s10, 4  ;;  %s894_s13 = int_to_ptr.vmem [resolvable:$true] %s893_s13 }
 0x18c   : >> { %v840_v53 = vunpack.c.l.bf16 %v838_v50  ;;  %v841_v54 = vunpack.c.h.bf16 %v838_v50  ;;  %v855_v55 = vld [vmem:[%s854_s22] sm:$0xff]  ;;  %v861_v56 = vstv %s849_s17  ;;  %v842_v57 = vunpack.c.l.bf16 %v839_v52  ;;  %v856_v58 = vld [vmem:[%s854_s22 + $0x8] sm:$0xff]  ;;  %s895_s16 = sshll.u32 (%p824_p0), %s892_s12, 4  ;;  %s881_s17 = scalar_lea.sflag (%p824_p0), [#allocation10], %s232_s14  ;;  %s896_s16 = int_to_ptr.hbm [resolvable:$true] %s895_s16 }
 0x18d   : >> { %v857_v59 = vunpack.c.l.bf16 %v855_v55  ;;  %v858_v60 = vunpack.c.h.bf16 %v855_v55  ;;  %v843_v61 = vunpack.c.h.bf16 %v839_v52  ;;  %v859_v0 = vunpack.c.l.bf16 %v856_v58  ;;  %s1503_s18 = sshra.s32 (%p824_p0), %s896_s16, 4  ;;  %s1509_s19 = scalar_lea.hbm (%p824_p0), %s1793_s8, 512  ;;  %s1504_s18 = int_to_ptr.hbm [resolvable:$true] %s1503_s18 }
 0x18e   : >> { %v845_v3 = vmul.f32 %v844_v51, %v840_v53  ;;  %v846_v4 = vmul.f32 %v844_v51, %v841_v54  ;;  %v847_v5 = vmul.f32 %v844_v51, %v842_v57  ;;  %v860_v6 = vunpack.c.h.bf16 %v856_v58  ;;  %s1505_s11 = scalar_lea.hbm (%p824_p0), %s1504_s18, 256  ;;  %p1510_p4 = scmp.lt.s32.totalorder (%p824_p0), %s1504_s18, %s1793_s8 }
 0x18f   : >> { %v862_v7 = vmul.f32 %v861_v56, %v857_v59  ;;  %v863_v8 = vmul.f32 %v861_v56, %v858_v60  ;;  %v848_v9 = vmul.f32 %v844_v51, %v843_v61  ;;  %v864_v10 = vmul.f32 %v861_v56, %v859_v0  ;;  %p1506_p1 = scmp.ne.s32.totalorder (%p824_p0), %s1504_s18, %s1505_s11  ;;  %p1511_p7 = scmp.lt.s32.totalorder (%p824_p0), %s1509_s19, %s1505_s11 }
 0x190   : >> { %v865_v11 = vmul.f32 %v861_v56, %v860_v6 }
 0x191   : >> { %v866_v12 = vadd.f32 %v862_v7, %v845_v3  ;;  %v867_v13 = vadd.f32 %v863_v8, %v846_v4  ;;  %v868_v14 = vadd.f32 %v864_v10, %v847_v5  ;;  %p1507_p2 = pnand (%p824_p0), %p1506_p1, %p1671_p5  ;;  %p1512_p8 = por (%p824_p0), %p1511_p7, %p1510_p4 }
 0x192   : >> { %v869_v15 = vadd.f32 %v865_v11, %v848_v9  ;;  %826 = sbr.rel (!%p824_p0) target bundleno = 387 (0x183), region = 86 }
 0x193   : >> { %v870_v16 = vpack.c.bf16 %v867_v13, %v866_v12  ;;  %p1508_p3 = pneg (%p824_p0), %p1507_p2 }
 0x194   : >> { %v871_v17 = vpack.c.bf16 %v869_v15, %v868_v14 }
 0x195   : >> { %878 = vst [vmem:[%s877_s25] sm:$0xff] %v870_v16  ;;  %p1513_p9 = pnand (%p824_p0), %p1512_p8, %p1508_p3 }
 0x196   : >> { %879 = vst [vmem:[%s877_s25 + $0x8] sm:$0xff] %v871_v17 }
 0x197   : > { %1516 = shalt.err (!%p1513_p9)
}
 0x198   : > { %s1574_s14 = smov 128   ;;  %s1575_s15 = smov 8  }
 0x199   : > { %1349 = dma.vmem_to_hbm [thread:$0]  (%p1671_p5), %s894_s13, 4096, %s896_s16, %s881_s17, %s1574_s14, %s1574_s14, %s1575_s15  }
 0x19a PF: > { %p1361_p10 = scmp.ge.s32.totalorder %s1561_s21, 2  ;;  %s910_s10 = sand.u32 1, %s1549_s1  }
 0x19b   : > { %s911_s25 = scalar_lea.sflag [#allocation10], %s910_s10 }
 0x19c   : > { %p1356_p11 = pnand %p1361_p10, %p1675_p6 }
 0x19e   : > { %p1357_p12 = pneg %p1356_p11 }
 0x1a0   : > { %1544 = dma.done.wait (%p1357_p12), %s911_s25, 4096  }
 0x1a1   : > { %1546 = vsyncadd (%p1357_p12), %s911_s25, 4294963200  ;;  %p42_p13 = scmp.ge.s32.totalorder %s1658_s23, 4   ;;  %s1799_s1 = smov %s1553_s20 }
 0x1a2   : > { %s1800_s20 = smov %s1557_s2  ;;  %s1801_s2 = smov %s1669_s26 }
 0x1a3   : > { %s1802_s21 = smov %s1658_s23  ;;  %44 = sbr.rel (!%p42_p13) target bundleno = 15 (0xf), region = 97 }
 0x1a8   :  { %917 = vsyncpa [#allocation9], 1 }
 0x1a9   :  { %919 = vsyncpa [#allocation9 + $0x1], 1 }
 0x1aa   :  { %920 = vsyncpa [#allocation10], 1 }
 0x1ab   :  { %922 = vsyncpa [#allocation10 + $0x1], 1 }

</bundles_post_ra>
